<compile_context>
chip_gen: v5e
topology: v5e:2x2
jax: 0.10.0
libtpu: 0.0.40
codegen_flags: <defaults>
</compile_context>

<pallas_src>
import functools

import jax
import jax.numpy as jnp
from jax.experimental import pallas as pl
from jax.experimental.pallas import tpu as pltpu

_LANE = 128
_SUBLANE_BF16 = 16


def _round_up(n, m):
    return ((n + m - 1) // m) * m


def _vmem_capacity_bytes():
    try:
        return int(pltpu.get_tpu_info().vmem_capacity_bytes)
    except Exception:
        return 64 << 20  # conservative (v7x per-core VMEM)


def _mlp_kernel(x_ref, w1_ref, b1_ref, w2_ref, b2_ref, w3_ref, b3_ref,
                o_ref, acc_ref):
    k = pl.program_id(1)

    @pl.when(k == 0)
    def _():
        acc_ref[...] = jnp.zeros_like(acc_ref)

    # fc1 partial matmul over the K tile (bf16 MXU inputs, f32 accumulation).
    # The f32->bf16 cast lives here so x is read from HBM exactly once, as f32.
    acc_ref[...] += jnp.dot(
        x_ref[...].astype(jnp.bfloat16), w1_ref[...],
        preferred_element_type=jnp.float32)

    @pl.when(k == pl.num_programs(1) - 1)
    def _():
        h = jnp.maximum(acc_ref[...] + b1_ref[...], 0.0)          # fc1 bias + relu
        h = jnp.dot(h.astype(jnp.bfloat16), w2_ref[...],
                    preferred_element_type=jnp.float32)
        h = jnp.maximum(h + b2_ref[...], 0.0)                      # fc2 bias + relu
        h = jnp.dot(h.astype(jnp.bfloat16), w3_ref[...],
                    preferred_element_type=jnp.float32)
        o_ref[...] = (h + b3_ref[...]).astype(o_ref.dtype)         # fc3 bias


def prepare_params(params):
    """One-time conversion of PyTorch-layout params (outside the per-call path).

    W (out, in) -> transposed to (in, out), zero-padded on BOTH dims up to the
    padded widths used by the kernel (lane-dense 128-wide outputs; K padded so
    block shape == array shape -> no OOB / masked weight reads), cast to bf16.
    b -> (1, out_pad) f32.  Zero padding is exact through bias-add + ReLU, so
    the math equals the unpadded model.
    """
    fc1, compression = params["w1"].shape
    fc2 = params["w2"].shape[0]
    nc = params["w3"].shape[0]
    fc1_p = _round_up(fc1, _LANE)
    fc2_p = _round_up(fc2, _LANE)
    nc_p = _round_up(nc, _LANE)

    def pad_weight(w, rows_p, cols_p):
        wt = w.T.astype(jnp.bfloat16)          # (in, out)
        out = jnp.zeros((rows_p, cols_p), jnp.bfloat16)
        return out.at[: wt.shape[0], : wt.shape[1]].set(wt)

    def pad_bias(b, cols_p):
        out = jnp.zeros((1, cols_p), jnp.float32)
        return out.at[0, : b.shape[0]].set(b.astype(jnp.float32))

    return {
        "w1": pad_weight(params["w1"], compression, fc1_p),
        "b1": pad_bias(params["b1"], fc1_p),
        "w2": pad_weight(params["w2"], fc1_p, fc2_p),
        "b2": pad_bias(params["b2"], fc2_p),
        "w3": pad_weight(params["w3"], fc2_p, nc_p),
        "b3": pad_bias(params["b3"], nc_p),
    }


def _choose_tiles(B, compression, fc1_p, fc2_p, nc_p, vmem_cap):
    # Batch tile: prefer 256 (full MXU height on v6e/v7x); shrink (floor 16,
    # bf16 sublane packing) until there are >= 2 batch steps so the "parallel"
    # axis can split across v7x's 2 TensorCores.
    tile_b = 256
    while tile_b > 16 and pl.cdiv(B, tile_b) < 2:
        tile_b //= 2

    # K tile for fc1: largest multiple-of-128 divisor of `compression` that
    # keeps the double-buffered f32 x tile + bf16 W1 tile inside the budget.
    fixed = (tile_b * fc1_p * 4                         # f32 accumulator scratch
             + 2 * tile_b * nc_p * 4                    # out double-buffer
             + 2 * (fc1_p * fc2_p + fc2_p * nc_p) * 2   # resident W2/W3 (x2 bufs)
             + 2 * (fc1_p + fc2_p + nc_p) * 4           # biases
             + 2 * tile_b * (fc1_p + fc2_p + nc_p) * 4)  # in-kernel f32 temporaries
    budget = int(vmem_cap * 0.55)
    avail = max(budget - fixed, 1 << 20)
    per_k = 2 * tile_b * 4 + 2 * fc1_p * 2              # x (f32) + W1 (bf16), double-buffered
    tile_k_max = max(avail // per_k, _LANE)

    if compression <= tile_k_max or compression % _LANE != 0:
        tile_k = compression          # full-K slab (single K step)
    else:
        m = compression // _LANE
        tile_k = _LANE
        for d in range(min(m, tile_k_max // _LANE), 0, -1):
            if m % d == 0:
                tile_k = _LANE * d
                break
    return tile_b, tile_k


@functools.partial(jax.jit, static_argnames=("compression", "num_classes"))
def mlp_forward(x, prepared, *, compression, num_classes):
    """x: (B, C, H, W) f32; prepared: output of prepare_params (padded bf16 weights)."""
    B = x.shape[0]
    x2d = x.reshape(B, compression)          # torch x.view(-1, compression); stays f32

    w1, b1 = prepared["w1"], prepared["b1"]
    w2, b2 = prepared["w2"], prepared["b2"]
    w3, b3 = prepared["w3"], prepared["b3"]
    assert w1.shape[0] == compression
    fc1_p, fc2_p, nc_p = w1.shape[1], w2.shape[1], w3.shape[1]
    assert w2.shape[0] == fc1_p and w3.shape[0] == fc2_p  # block shape == array shape

    vmem_cap = _vmem_capacity_bytes()
    tile_b, tile_k = _choose_tiles(B, compression, fc1_p, fc2_p, nc_p, vmem_cap)
    grid = (pl.cdiv(B, tile_b), compression // tile_k)

    # Leave headroom for Mosaic internal scratch (~51 MiB on v7x, ~102 MiB on v5e/v6e).
    vmem_limit = max(32 << 20, min(int(vmem_cap * 0.8), vmem_cap - (8 << 20)))

    flops = 2 * B * (compression * fc1_p + fc1_p * fc2_p + fc2_p * nc_p)
    bytes_accessed = (B * compression * 4
                      + (compression * fc1_p + fc1_p * fc2_p + fc2_p * nc_p) * 2
                      + (fc1_p + fc2_p + nc_p) * 4
                      + B * nc_p * 4)

    out_padded = pl.pallas_call(
        _mlp_kernel,
        out_shape=jax.ShapeDtypeStruct((B, nc_p), jnp.float32),
        grid_spec=pltpu.PrefetchScalarGridSpec(
            num_scalar_prefetch=0,
            grid=grid,
            in_specs=[
                pl.BlockSpec((tile_b, tile_k), lambda i, k: (i, k)),     # x tile (f32)
                pl.BlockSpec((tile_k, fc1_p), lambda i, k: (k, 0)),      # W1 K-tile
                pl.BlockSpec((1, fc1_p), lambda i, k: (0, 0)),           # b1 (resident)
                pl.BlockSpec((fc1_p, fc2_p), lambda i, k: (0, 0)),       # W2 (resident)
                pl.BlockSpec((1, fc2_p), lambda i, k: (0, 0)),           # b2
                pl.BlockSpec((fc2_p, nc_p), lambda i, k: (0, 0)),        # W3 (resident)
                pl.BlockSpec((1, nc_p), lambda i, k: (0, 0)),            # b3
            ],
            out_specs=pl.BlockSpec((tile_b, nc_p), lambda i, k: (i, 0)),
            scratch_shapes=[pltpu.VMEM((tile_b, fc1_p), jnp.float32)],   # fc1 accumulator
        ),
        compiler_params=pltpu.CompilerParams(
            dimension_semantics=("parallel", "arbitrary"),
            vmem_limit_bytes=int(vmem_limit),
        ),
        cost_estimate=pl.CostEstimate(
            flops=int(flops), transcendentals=0, bytes_accessed=int(bytes_accessed)),
    )(x2d, w1, b1, w2, b2, w3, b3)

    return out_padded[:, :num_classes]


def xavier_uniform(key, out_features, in_features):
    bound = jnp.sqrt(6.0 / (in_features + out_features))
    return jax.random.uniform(
        key, (out_features, in_features), jnp.float32, minval=-bound, maxval=bound
    )


def linear_bias(key, out_features, in_features):
    # PyTorch nn.Linear default bias init: U(-1/sqrt(fan_in), 1/sqrt(fan_in))
    bound = 1.0 / jnp.sqrt(jnp.float32(in_features))
    return jax.random.uniform(
        key, (out_features,), jnp.float32, minval=-bound, maxval=bound
    )


def init_mlp_params(key, in_channel, im_size, num_classes, fc1, fc2):
    compression = in_channel * im_size * im_size
    k = jax.random.split(key, 6)
    return {
        "w1": xavier_uniform(k[0], fc1, compression),
        "b1": linear_bias(k[1], fc1, compression),
        "w2": xavier_uniform(k[2], fc2, fc1),
        "b2": linear_bias(k[3], fc2, fc1),
        "w3": xavier_uniform(k[4], num_classes, fc2),
        "b3": linear_bias(k[5], num_classes, fc2),
    }, compression


if __name__ == "__main__":
    # Small shapes consistent with the module's forward.
    batch = 2
    in_channel = 1
    im_size = 16
    num_classes = 10
    fc_channel1 = 32
    fc_channel2 = 32

    key = jax.random.PRNGKey(0)
    kp, kx = jax.random.split(key)
    params, compression = init_mlp_params(
        kp, in_channel, im_size, num_classes, fc_channel1, fc_channel2
    )
    x = jax.random.normal(kx, (batch, in_channel, im_size, im_size), jnp.float32)

    # One-time param prep (transpose + pad both dims + bf16 cast), outside the per-call path.
    prepared = jax.tree_util.tree_map(jax.block_until_ready, prepare_params(params))

    out = mlp_forward(x, prepared, compression=compression, num_classes=num_classes)
    out = jax.block_until_ready(out)

    # Pure-JAX f32 reference of the same math (kernel uses bf16 MXU inputs with
    # f32 accumulation, so compare with a bf16-appropriate tolerance).
    def ref(x):
        h = x.reshape(x.shape[0], compression)
        h = jnp.maximum(h @ params["w1"].T + params["b1"], 0.0)
        h = jnp.maximum(h @ params["w2"].T + params["b2"], 0.0)
        return h @ params["w3"].T + params["b3"]

    expected = ref(x)
    assert out.shape == (batch, num_classes)
    assert bool(jnp.all(jnp.isfinite(out))), "non-finite output"
    assert jnp.allclose(out, expected, atol=5e-2, rtol=5e-2), (
        float(jnp.max(jnp.abs(out - expected)))
    )
    print("KERNEL_OK")
</pallas_src>

<mosaic_0001>
module attributes {stable_mosaic.version = 11 : i64} {
  func.func @_mlp_kernel(%arg0: i32, %arg1: i32, %arg2: memref<16x256xf32, #tpu.memory_space<vmem>>, %arg3: memref<256x128xbf16, #tpu.memory_space<vmem>>, %arg4: memref<1x128xf32, #tpu.memory_space<vmem>>, %arg5: memref<128x128xbf16, #tpu.memory_space<vmem>>, %arg6: memref<1x128xf32, #tpu.memory_space<vmem>>, %arg7: memref<128x128xbf16, #tpu.memory_space<vmem>>, %arg8: memref<1x128xf32, #tpu.memory_space<vmem>>, %arg9: memref<16x128xf32, #tpu.memory_space<vmem>>, %arg10: memref<16x128xf32, #tpu.memory_space<vmem>>) attributes {dimension_semantics = [#tpu.dimension_semantics<parallel>, #tpu.dimension_semantics<arbitrary>], iteration_bounds = array<i64: 1, 1>, scalar_prefetch = 0 : i64, scratch_operands = 1 : i64, tpu.core_type = #tpu.core_type<tc>, window_params = [{transform_indices = @transform_0, window_bounds = array<i64: 16, 256>}, {transform_indices = @transform_1, window_bounds = array<i64: 256, 128>}, {pipeline_mode = #tpu.pipeline_mode<synchronous>, transform_indices = @transform_2, window_bounds = array<i64: 1, 128>}, {pipeline_mode = #tpu.pipeline_mode<synchronous>, transform_indices = @transform_3, window_bounds = array<i64: 128, 128>}, {pipeline_mode = #tpu.pipeline_mode<synchronous>, transform_indices = @transform_4, window_bounds = array<i64: 1, 128>}, {pipeline_mode = #tpu.pipeline_mode<synchronous>, transform_indices = @transform_5, window_bounds = array<i64: 128, 128>}, {pipeline_mode = #tpu.pipeline_mode<synchronous>, transform_indices = @transform_6, window_bounds = array<i64: 1, 128>}, {transform_indices = @transform_7, window_bounds = array<i64: 16, 128>}]} {
    %c0_i32 = arith.constant 0 : i32
    %0 = arith.cmpi eq, %arg1, %c0_i32 : i32
    %1 = arith.extui %0 : i1 to i32
    %c0_i32_0 = arith.constant 0 : i32
    %2 = arith.cmpi ne, %1, %c0_i32_0 : i32
    scf.if %2 {
      %cst_10 = arith.constant 0.000000e+00 : f32
      %13 = vector.broadcast %cst_10 : f32 to vector<16x128xf32>
      %c0_11 = arith.constant 0 : index
      %c0_12 = arith.constant 0 : index
      %14 = vector.load %arg10[%c0_11, %c0_12] : memref<16x128xf32, #tpu.memory_space<vmem>>, vector<16x128xf32>
      tpu.vector_store %arg10[%c0_11, %c0_12], %13 {strides = array<i32>} : memref<16x128xf32, #tpu.memory_space<vmem>>, vector<16x128xf32>,
    } else {
    }
    %c0 = arith.constant 0 : index
    %c0_1 = arith.constant 0 : index
    %3 = vector.load %arg10[%c0, %c0_1] : memref<16x128xf32, #tpu.memory_space<vmem>>, vector<16x128xf32>
    %c0_2 = arith.constant 0 : index
    %c0_3 = arith.constant 0 : index
    %4 = vector.load %arg2[%c0_2, %c0_3] : memref<16x256xf32, #tpu.memory_space<vmem>>, vector<16x256xf32>
    %5 = arith.truncf %4 : vector<16x256xf32> to vector<16x256xbf16>
    %c0_4 = arith.constant 0 : index
    %c0_5 = arith.constant 0 : index
    %6 = vector.load %arg3[%c0_4, %c0_5] : memref<256x128xbf16, #tpu.memory_space<vmem>>, vector<256x128xbf16>
    %cst = arith.constant dense<0.000000e+00> : vector<16x128xf32>
    %7 = tpu.matmul %5, %6, %cst {dimension_numbers = #tpu.dot_dimension_numbers<[1], [0], [0], [1], [0, 0, 1, 1], [], []>} : vector<16x256xbf16>, vector<256x128xbf16>, vector<16x128xf32> -> vector<16x128xf32>
    %8 = arith.addf %3, %7 : vector<16x128xf32>
    %c0_6 = arith.constant 0 : index
    %c0_7 = arith.constant 0 : index
    %9 = vector.load %arg10[%c0_6, %c0_7] : memref<16x128xf32, #tpu.memory_space<vmem>>, vector<16x128xf32>
    tpu.vector_store %arg10[%c0_6, %c0_7], %8 {strides = array<i32>} : memref<16x128xf32, #tpu.memory_space<vmem>>, vector<16x128xf32>,
    %c0_i32_8 = arith.constant 0 : i32
    %10 = arith.cmpi eq, %arg1, %c0_i32_8 : i32
    %11 = arith.extui %10 : i1 to i32
    %c0_i32_9 = arith.constant 0 : i32
    %12 = arith.cmpi ne, %11, %c0_i32_9 : i32
    scf.if %12 {
      %c0_10 = arith.constant 0 : index
      %c0_11 = arith.constant 0 : index
      %13 = vector.load %arg10[%c0_10, %c0_11] : memref<16x128xf32, #tpu.memory_space<vmem>>, vector<16x128xf32>
      %c0_12 = arith.constant 0 : index
      %c0_13 = arith.constant 0 : index
      %14 = vector.load %arg4[%c0_12, %c0_13] : memref<1x128xf32, #tpu.memory_space<vmem>>, vector<1x128xf32>
      %15 = vector.broadcast %14 : vector<1x128xf32> to vector<16x128xf32>
      %16 = arith.addf %13, %15 : vector<16x128xf32>
      %cst_14 = arith.constant 0.000000e+00 : f32
      %17 = vector.broadcast %cst_14 : f32 to vector<16x128xf32>
      %18 = arith.maximumf %16, %17 : vector<16x128xf32>
      %19 = arith.truncf %18 : vector<16x128xf32> to vector<16x128xbf16>
      %c0_15 = arith.constant 0 : index
      %c0_16 = arith.constant 0 : index
      %20 = vector.load %arg5[%c0_15, %c0_16] : memref<128x128xbf16, #tpu.memory_space<vmem>>, vector<128x128xbf16>
      %cst_17 = arith.constant dense<0.000000e+00> : vector<16x128xf32>
      %21 = tpu.matmul %19, %20, %cst_17 {dimension_numbers = #tpu.dot_dimension_numbers<[1], [0], [0], [1], [0, 0, 1, 1], [], []>} : vector<16x128xbf16>, vector<128x128xbf16>, vector<16x128xf32> -> vector<16x128xf32>
      %c0_18 = arith.constant 0 : index
      %c0_19 = arith.constant 0 : index
      %22 = vector.load %arg6[%c0_18, %c0_19] : memref<1x128xf32, #tpu.memory_space<vmem>>, vector<1x128xf32>
      %23 = vector.broadcast %22 : vector<1x128xf32> to vector<16x128xf32>
      %24 = arith.addf %21, %23 : vector<16x128xf32>
      %cst_20 = arith.constant 0.000000e+00 : f32
      %25 = vector.broadcast %cst_20 : f32 to vector<16x128xf32>
      %26 = arith.maximumf %24, %25 : vector<16x128xf32>
      %27 = arith.truncf %26 : vector<16x128xf32> to vector<16x128xbf16>
      %c0_21 = arith.constant 0 : index
      %c0_22 = arith.constant 0 : index
      %28 = vector.load %arg7[%c0_21, %c0_22] : memref<128x128xbf16, #tpu.memory_space<vmem>>, vector<128x128xbf16>
      %cst_23 = arith.constant dense<0.000000e+00> : vector<16x128xf32>
      %29 = tpu.matmul %27, %28, %cst_23 {dimension_numbers = #tpu.dot_dimension_numbers<[1], [0], [0], [1], [0, 0, 1, 1], [], []>} : vector<16x128xbf16>, vector<128x128xbf16>, vector<16x128xf32> -> vector<16x128xf32>
      %c0_24 = arith.constant 0 : index
      %c0_25 = arith.constant 0 : index
      %30 = vector.load %arg8[%c0_24, %c0_25] : memref<1x128xf32, #tpu.memory_space<vmem>>, vector<1x128xf32>
      %31 = vector.broadcast %30 : vector<1x128xf32> to vector<16x128xf32>
      %32 = arith.addf %29, %31 : vector<16x128xf32>
      %c0_26 = arith.constant 0 : index
      %c0_27 = arith.constant 0 : index
      %33 = vector.load %arg9[%c0_26, %c0_27] : memref<16x128xf32, #tpu.memory_space<vmem>>, vector<16x128xf32>
      tpu.vector_store %arg9[%c0_26, %c0_27], %32 {strides = array<i32>} : memref<16x128xf32, #tpu.memory_space<vmem>>, vector<16x128xf32>,
    } else {
    }
    return
  }
  func.func @transform_0(%arg0: i32, %arg1: i32) -> (i32, i32) {
    %c0_i32 = arith.constant 0 : i32
    return %arg0, %arg1 : i32, i32
  }
  func.func @transform_1(%arg0: i32, %arg1: i32) -> (i32, i32) {
    %c0_i32 = arith.constant 0 : i32
    %c0_i32_0 = arith.constant 0 : i32
    return %arg1, %c0_i32 : i32, i32
  }
  func.func @transform_2(%arg0: i32, %arg1: i32) -> (i32, i32) {
    %c0_i32 = arith.constant 0 : i32
    %c0_i32_0 = arith.constant 0 : i32
    %c0_i32_1 = arith.constant 0 : i32
    return %c0_i32, %c0_i32_0 : i32, i32
  }
  func.func @transform_3(%arg0: i32, %arg1: i32) -> (i32, i32) {
    %c0_i32 = arith.constant 0 : i32
    %c0_i32_0 = arith.constant 0 : i32
    %c0_i32_1 = arith.constant 0 : i32
    return %c0_i32, %c0_i32_0 : i32, i32
  }
  func.func @transform_4(%arg0: i32, %arg1: i32) -> (i32, i32) {
    %c0_i32 = arith.constant 0 : i32
    %c0_i32_0 = arith.constant 0 : i32
    %c0_i32_1 = arith.constant 0 : i32
    return %c0_i32, %c0_i32_0 : i32, i32
  }
  func.func @transform_5(%arg0: i32, %arg1: i32) -> (i32, i32) {
    %c0_i32 = arith.constant 0 : i32
    %c0_i32_0 = arith.constant 0 : i32
    %c0_i32_1 = arith.constant 0 : i32
    return %c0_i32, %c0_i32_0 : i32, i32
  }
  func.func @transform_6(%arg0: i32, %arg1: i32) -> (i32, i32) {
    %c0_i32 = arith.constant 0 : i32
    %c0_i32_0 = arith.constant 0 : i32
    %c0_i32_1 = arith.constant 0 : i32
    return %c0_i32, %c0_i32_0 : i32, i32
  }
  func.func @transform_7(%arg0: i32, %arg1: i32) -> (i32, i32) {
    %c0_i32 = arith.constant 0 : i32
    %c0_i32_0 = arith.constant 0 : i32
    return %arg0, %c0_i32 : i32, i32
  }
}

</mosaic_0001>

<bundles_post_ra>
// kernel: mlp_forward.1
= control target key start
LH: loop header
LB: loop body
LE: loop exit
PB: predicated region body
PF: predicated region fallthrough
CT: control target
= control target key end

     0   :  { %12 = vsyncpa [#allocation4], 0  ;;  %s852_s0 = inlined_call_operand.vmem [shape: f32[2,256], index: 0, kind: input, shape index: {}]   ;;  %s853_s1 = inlined_call_operand.hbm [shape: bf16[256,128], index: 1, kind: input, shape index: {}]   ;;  %s854_s2 = inlined_call_operand.vmem [shape: f32[1,128], index: 2, kind: input, shape index: {}]   ;;  %s855_s3 = inlined_call_operand.hbm [shape: bf16[128,128], index: 3, kind: input, shape index: {}]   ;;  %s856_s4 = inlined_call_operand.vmem [shape: f32[1,128], index: 4, kind: input, shape index: {}]   ;;  %s857_s5 = inlined_call_operand.hbm [shape: bf16[128,128], index: 5, kind: input, shape index: {}]   ;;  %s858_s6 = inlined_call_operand.vmem [shape: f32[1,128], index: 6, kind: input, shape index: {}]   ;;  %s859_s7 = inlined_call_operand.hbm [shape: f32[2,128], index: 7, kind: output, shape index: {}]  }
   0x1   :  { %13 = vsyncpa [#allocation7], 0 }
   0x2   :  { %14 = vsyncpa [#allocation5], 0  ;;  %s36_s26 = sshll.u32 %s855_s3, 4  ;;  %s759_s27 = smov [#allocation6]   ;;  %s37_s26 = int_to_ptr.hbm [resolvable:$true] %s36_s26 }
   0x3   :  { %s38_s28 = sshll.u32 %s759_s27, 4  ;;  %s21_s8 = sshll.u32 %s853_s1, 4  ;;  %s39_s28 = int_to_ptr.vmem [resolvable:$true] %s38_s28  ;;  %s22_s8 = int_to_ptr.hbm [resolvable:$true] %s21_s8 }
   0x4   :  { %s760_s9 = smov 64   ;;  %s761_s10 = smov 4  }
   0x5   :  { %44 = dma.hbm_to_vmem [thread:$0]  %s37_s26, 1024, %s39_s28, [#allocation7], %s760_s9, %s760_s9, %s761_s10  }
   0x6   :  { %s762_s11 = smov [#allocation3]   ;;  %s51_s15 = sshll.u32 %s857_s5, 4  ;;  %s52_s15 = int_to_ptr.hbm [resolvable:$true] %s51_s15 }
   0x7   :  { %s23_s12 = sshll.u32 %s762_s11, 4  ;;  %s763_s3 = smov [#allocation8]   ;;  %s24_s12 = int_to_ptr.vmem [resolvable:$true] %s23_s12 }
   0x8   :  { %29 = dma.hbm_to_vmem [thread:$0]  %s22_s8, 2048, %s24_s12, [#allocation4], %s760_s9, %s760_s9, %s761_s10  }
   0x9   :  { %s53_s16 = sshll.u32 %s763_s3, 4  ;;  %s54_s16 = int_to_ptr.vmem [resolvable:$true] %s53_s16 }
   0xa   :  { %59 = dma.hbm_to_vmem [thread:$0]  %s52_s15, 1024, %s54_s16, [#allocation7], %s760_s9, %s760_s9, %s761_s10  }
   0xb   :  { %753 = dma.done.wait [#allocation4], 2048  }
   0xc   :  { %754 = vsyncadd [#allocation4], 4294965248 }
   0xd   :  { %755 = dma.done.wait [#allocation7], 2048  }
   0xe   :  { %756 = vsyncadd [#allocation7], 4294965248  ;;  %v621_v0 = vld [vmem:[#allocation3 + $0x38] sm:$0xff]  ;;  %v620_v2 = vld [vmem:[#allocation3 + $0x30] sm:$0xff] }
   0xf   :  { %v629_v1 = vld [vmem:[#allocation3 + $0x78] sm:$0xff]  ;;  %251 = vmatpush.bf16.msra.mxu0 %v621_v0  ;;  %v628_v3 = vld [vmem:[#allocation3 + $0x70] sm:$0xff]  ;;  %v619_v5 = vld [vmem:[#allocation3 + $0x28] sm:$0xff] }
  0x10   :  { %265 = vmatpush.bf16.msra.mxu1 %v629_v1  ;;  %v82_v4 = vld [vmem:[%s852_s0] sm:$0xf]  ;;  %v627_v6 = vld [vmem:[#allocation3 + $0x68] sm:$0xff]  ;;  %v83_v7 = vld [vmem:[%s852_s0 + $0x4] sm:$0xf] }
  0x11   :  { %v84_v8 = vld [vmem:[%s852_s0 + $0x8] sm:$0xf]  ;;  %v85_v9 = vld [vmem:[%s852_s0 + $0xc] sm:$0xf]  ;;  %v86_v12 = vld [vmem:[%s852_s0 + $0x10] sm:$0xf] }
  0x12   :  { %v618_v10 = vld [vmem:[#allocation3 + $0x20] sm:$0xff]  ;;  %98 = vst [vmem:[#allocation1] ss:$4 sm:$0xff] %v82_v4  ;;  %v637_v13 = vld [vmem:[#allocation6 + $0x38] sm:$0xff]  ;;  %v87_v14 = vld [vmem:[%s852_s0 + $0x14] sm:$0xf] }
  0x13   :  { %252 = vmatpush.bf16.msra.mxu0 %v620_v2  ;;  %v626_v11 = vld [vmem:[#allocation3 + $0x60] sm:$0xff]  ;;  %100 = vst [vmem:[#allocation1 + $0x1] ss:$4 sm:$0xff] %v83_v7  ;;  %v88_v15 = vld [vmem:[%s852_s0 + $0x18] sm:$0xf]  ;;  %365 = vmatpush.bf16.msra.mxu2 %v637_v13  ;;  %v617_v18 = vld [vmem:[#allocation3 + $0x18] sm:$0xff] }
  0x14   :  { %266 = vmatpush.bf16.msra.mxu1 %v628_v3  ;;  %102 = vst [vmem:[#allocation1 + $0x2] ss:$4 sm:$0xff] %v84_v8  ;;  %v636_v16 = vld [vmem:[#allocation6 + $0x30] sm:$0xff]  ;;  %v625_v19 = vld [vmem:[#allocation3 + $0x58] sm:$0xff]  ;;  %v635_v20 = vld [vmem:[#allocation6 + $0x28] sm:$0xff] }
  0x15   :  { %104 = vst [vmem:[#allocation1 + $0x3] ss:$4 sm:$0xff] %v85_v9  ;;  %v89_v17 = vld [vmem:[%s852_s0 + $0x1c] sm:$0xf]  ;;  %v634_v23 = vld [vmem:[#allocation6 + $0x20] sm:$0xff]  ;;  %v615_v24 = vld [vmem:[#allocation3 + $0x8] sm:$0xff] }
  0x16   :  { %106 = vst [vmem:[#allocation1 + $0x20] ss:$4 sm:$0xff] %v86_v12  ;;  %v616_v21 = vld [vmem:[#allocation3 + $0x10] sm:$0xff]  ;;  %v623_v25 = vld [vmem:[#allocation3 + $0x48] sm:$0xff]  ;;  %v614_v26 = vld [vmem:[#allocation3] sm:$0xff] }
  0x17   :  { %253 = vmatpush.bf16.msra.mxu0 %v619_v5  ;;  %108 = vst [vmem:[#allocation1 + $0x21] ss:$4 sm:$0xff] %v87_v14  ;;  %366 = vmatpush.bf16.msra.mxu2 %v636_v16  ;;  %v624_v22 = vld [vmem:[#allocation3 + $0x50] sm:$0xff]  ;;  %v622_v27 = vld [vmem:[#allocation3 + $0x40] sm:$0xff]  ;;  %v633_v34 = vld [vmem:[#allocation6 + $0x18] sm:$0xff] }
  0x18   :  { %267 = vmatpush.bf16.msra.mxu1 %v627_v6  ;;  %110 = vst [vmem:[#allocation1 + $0x22] ss:$4 sm:$0xff] %v88_v15  ;;  %v632_v35 = vld [vmem:[#allocation6 + $0x10] sm:$0xff]  ;;  %v631_v36 = vld [vmem:[#allocation6 + $0x8] sm:$0xff]  ;;  %v630_v37 = vld [vmem:[#allocation6] sm:$0xff] }
  0x19   :  { %112 = vst [vmem:[#allocation1 + $0x23] ss:$4 sm:$0xff] %v89_v17  ;;  %v645_v38 = vld [vmem:[#allocation8 + $0x38] sm:$0xff]  ;;  %v644_v39 = vld [vmem:[#allocation8 + $0x30] sm:$0xff]  ;;  %v643_v40 = vld [vmem:[#allocation8 + $0x28] sm:$0xff] }
  0x1a   :  { %450 = vmatpush.bf16.msra.mxu3 %v645_v38  ;;  %v642_v41 = vld [vmem:[#allocation8 + $0x20] sm:$0xff]  ;;  %v654_v45 = vld [vmem:[%s854_s2] ss:$0 sm:$0xff]  ;;  %v640_v55 = vld [vmem:[#allocation8 + $0x10] sm:$0xff] }
  0x1b   :  { %254 = vmatpush.bf16.msra.mxu0 %v618_v10  ;;  %367 = vmatpush.bf16.msra.mxu2 %v635_v20  ;;  %v641_v54 = vld [vmem:[#allocation8 + $0x18] sm:$0xff]  ;;  %v639_v56 = vld [vmem:[#allocation8 + $0x8] sm:$0xff]  ;;  %v638_v57 = vld [vmem:[#allocation8] sm:$0xff] }
  0x1c   :  { %268 = vmatpush.bf16.msra.mxu1 %v626_v11  ;;  %v113_v28 = vld.sshfl [vmem:[#allocation1] sm:$0xff pattern:$0x73625140]  ;;  %v114_v29 = vld.sshfl [vmem:[#allocation1 + $0x8] sm:$0xff pattern:$0x73625140] }
  0x1d   :  { %v655_v59 = vld [vmem:[%s856_s4] ss:$0 sm:$0xff] }
  0x1e   :  { %451 = vmatpush.bf16.msra.mxu3 %v644_v39  ;;  %v656_v2 = vld [vmem:[%s858_s6] ss:$0 sm:$0xff] }
  0x1f   :  { %255 = vmatpush.bf16.msra.mxu0 %v617_v18  ;;  %368 = vmatpush.bf16.msra.mxu2 %v634_v23 }
  0x20   :  { %269 = vmatpush.bf16.msra.mxu1 %v625_v19  ;;  %v115_v30 = vld.sshfl [vmem:[#allocation1 + $0x20] sm:$0xff pattern:$0x73625140]  ;;  %v116_v31 = vld.sshfl [vmem:[#allocation1 + $0x28] sm:$0xff pattern:$0x73625140] }
  0x21   :  { %v121_v32 = vpack.c.bf16 %v115_v30, %v113_v28  ;;  %v122_v33 = vpack.c.bf16 %v116_v31, %v114_v29 }
  0x22   :  { %452 = vmatpush.bf16.msra.mxu3 %v643_v40 }
  0x23   :  { %256 = vmatpush.bf16.msra.mxu0 %v616_v21  ;;  %369 = vmatpush.bf16.msra.mxu2 %v633_v34 }
  0x24   :  { %270 = vmatpush.bf16.msra.mxu1 %v624_v22 }
  0x26   :  { %453 = vmatpush.bf16.msra.mxu3 %v642_v41 }
  0x27   :  { %257 = vmatpush.bf16.msra.mxu0 %v615_v24  ;;  %370 = vmatpush.bf16.msra.mxu2 %v632_v35 }
  0x28   :  { %271 = vmatpush.bf16.msra.mxu1 %v623_v25 }
  0x2a   :  { %454 = vmatpush.bf16.msra.mxu3 %v641_v54 }
  0x2b   :  { %258 = vmatpush.bf16.msra.mxu0 %v614_v26  ;;  %371 = vmatpush.bf16.msra.mxu2 %v631_v36 }
  0x2c   :  { %272 = vmatpush.bf16.msra.mxu1 %v622_v27 }
  0x2e   :  { %259 = vmatmul.bf16.vlgmr.msra.gmra.mxu0 %v121_v32  ;;  %455 = vmatpush.bf16.msra.mxu3 %v640_v55 }
  0x2f   :  { %273 = vmatmul.bf16.vlgmr.msra.gmra.mxu1 %v122_v33  ;;  %372 = vmatpush.bf16.msra.mxu2 %v630_v37 }
  0x32   :  { %456 = vmatpush.bf16.msra.mxu3 %v639_v56 }
  0x36   :  { %457 = vmatpush.bf16.msra.mxu3 %v638_v57 }
  0xab   :  { %v260_v42 = vpop.f32.mrf.mxu0 }
  0xac   :  { %v274_v43 = vpop.f32.mrf.mxu1 }
  0xad   :  { %v275_v44 = vadd.f32 %v274_v43, %v260_v42 }
  0xaf   :  { %v292_v48 = vadd.f32 %v654_v45, %v275_v44 }
  0xb1   :  { %v294_v51 = vmax.f32 %v292_v48, 0.0 }
  0xb3   :  { %v262_v46 = vpop.f32.mrf.mxu0 }
  0xb4   :  { %v276_v47 = vpop.f32.mrf.mxu1 }
  0xb5   :  { %v277_v49 = vadd.f32 %v276_v47, %v262_v46 }
  0xb7   :  { %v293_v50 = vadd.f32 %v654_v45, %v277_v49 }
  0xb9   :  { %v295_v52 = vmax.f32 %v293_v50, 0.0 }
  0xbb   :  { %v296_v53 = vpack.c.bf16 %v295_v52, %v294_v51 }
  0xbd   :  { %373 = vmatmul.bf16.vlgmr.msra.gmra.mxu2 %v296_v53 }
 0x140   :  { %v374_v58 = vpop.f32.mrf.mxu2 }
 0x141   :  { %v375_v60 = vadd.f32 %v655_v59, %v374_v58 }
 0x143   :  { %v379_v63 = vmax.f32 %v375_v60, 0.0 }
 0x148   :  { %v376_v61 = vpop.f32.mrf.mxu2 }
 0x149   :  { %v377_v62 = vadd.f32 %v655_v59, %v376_v61 }
 0x14b   :  { %v380_v0 = vmax.f32 %v377_v62, 0.0 }
 0x14d   :  { %v381_v1 = vpack.c.bf16 %v380_v0, %v379_v63 }
 0x14f   :  { %458 = vmatmul.bf16.vlgmr.msra.gmra.mxu3 %v381_v1 }
 0x1d2   :  { %v459_v3 = vpop.f32.mrf.mxu3 }
 0x1d3   :  { %v460_v4 = vadd.f32 %v656_v2, %v459_v3 }
 0x1d5   :  { %464 = vst [vmem:[#allocation9] sm:$0xff] %v460_v4 }
 0x1da   :  { %v461_v5 = vpop.f32.mrf.mxu3 }
 0x1db   :  { %v462_v6 = vadd.f32 %v656_v2, %v461_v5 }
 0x1dd   :  { %465 = vst [vmem:[#allocation9 + $0x8] sm:$0xff] %v462_v6 }
 0x1de   :  { %469 = vsyncadd [#allocation5], 224  ;;  %s472_s13 = sshll.u32 %s859_s7, 4  ;;  %s764_s14 = smov [#allocation9]   ;;  %s473_s13 = int_to_ptr.hbm [resolvable:$true] %s472_s13 }
 0x1df   :  { %s470_s15 = sshll.u32 %s764_s14, 4  ;;  %s765_s3 = smov 32   ;;  %s471_s15 = int_to_ptr.vmem [resolvable:$true] %s470_s15 }
 0x1e0   :  { %s766_s16 = smov 2  }
 0x1e1   :  { %478 = dma.vmem_to_hbm [thread:$0]  %s471_s15, 32, %s473_s13, [#allocation5], %s765_s3, %s765_s3, %s766_s16  }
 0x1e2   :  { %757 = dma.done.wait [#allocation5], 256  }
 0x1e3   :  { %758 = vsyncadd [#allocation5], 4294967040 }
 0x1e4   :  { %483 = vsyncpa [#allocation4], 1 }
 0x1e5   :  { %484 = vsyncpa [#allocation7], 1 }
 0x1e6   :  { %485 = vsyncpa [#allocation5], 1 }

</bundles_post_ra>
